<compile_context>
chip_gen: v7x
topology: tpu7x:2x2x1
jax: 0.10.0
libtpu: 0.0.40
codegen_flags: <defaults>
</compile_context>

<pallas_src>
import functools

import jax
import jax.numpy as jnp
import numpy as np
from jax.experimental import pallas as pl
from jax.experimental.pallas import tpu as pltpu

BN_EPS = 1e-5


# --------------------------------------------------------------------------------------
# helpers
# --------------------------------------------------------------------------------------
def _round_up(x, m):
    return ((x + m - 1) // m) * m


def _pad2(a, rows, cols):
    pr, pc = rows - a.shape[0], cols - a.shape[1]
    if pr or pc:
        a = jnp.pad(a, ((0, pr), (0, pc)))
    return a


def _pick_tile(total, want):
    """Largest multiple of 128 dividing `total` (a multiple of 128) and <= want."""
    t = max(128, (min(want, total) // 128) * 128)
    while total % t:
        t -= 128
    return max(t, 128)


def _choose_tile_pad(dim, want, min_tiles=1):
    """Pick a lane-dense tile (multiple of 128) and pad `dim` up to a multiple of it.

    Prefers wide tiles (fewer grid steps / bigger DMAs) but rejects >25% column padding;
    with min_tiles=2 the tile is capped so the 'parallel' axis has >=2 tiles (megacore).
    """
    d128 = _round_up(dim, 128)
    cap = max(128, _round_up(min(want, d128), 128))
    if min_tiles > 1 and d128 > 128:
        cap = min(cap, _round_up(-(-d128 // min_tiles), 128))
    best = None
    for t in range(cap, 127, -128):
        pad = _round_up(d128, t) - d128
        score = (pad * 4 > d128, -t, pad)       # reject >25% padding, then widest tile
        if best is None or score < best[0]:
            best = (score, t)
    tile = best[1]
    return tile, _round_up(d128, tile)


def _vmem_cap():
    phys = 64 << 20  # conservative default (v7x per-TC VMEM)
    try:
        info = pltpu.get_tpu_info()
        phys = int(getattr(info, "vmem_capacity_bytes", phys)) or phys
    except Exception:
        pass
    # leave headroom for compiler-internal scratch; ~100 MiB usable on 128 MiB parts
    return int(min(max(phys - (12 << 20), 16 << 20), 100 << 20))


def _vmem_limit(nbytes, cap):
    return int(min(max(2 * nbytes + (4 << 20), 16 << 20), cap))


def _pack_bn(bias, gamma, beta, extra, width):
    """Stack (bias, gamma, beta[, extra]) into one (8, width) f32 array (rows 0..)."""
    rows = [jnp.reshape(bias, (1, -1)), jnp.reshape(gamma, (1, -1)),
            jnp.reshape(beta, (1, -1))]
    if extra is not None:
        rows.append(jnp.reshape(extra, (1, -1)))
    packed = jnp.concatenate(rows, axis=0).astype(jnp.float32)
    return _pad2(packed, 8, width)


# --------------------------------------------------------------------------------------
# Fused kernel (whole block in one pallas_call; used when the working set is small)
# --------------------------------------------------------------------------------------
def _fused_kernel(inv_b, has_shortcut,
                  alpha_ref,            # SMEM (1,) f32
                  x_ref,                # VMEM (B, Fin_p) bf16
                  w1_ref,               # VMEM (Fin_p, Fout_p) bf16
                  bnp1_ref,             # VMEM (8, Fout_p) f32: b1,gamma1,beta1[,bs]
                  w2_ref,               # VMEM (Fout_p, Fout_p) bf16
                  bnp2_ref,             # VMEM (8, Fout_p) f32: b2,gamma2,beta2
                  sc_in_ref,            # VMEM ws (Fin_p,Fout_p) bf16  OR  x (B,Fout_p) f32
                  o_ref):               # VMEM (B, Fout_p) f32
    xb = x_ref[...]
    bnp1 = bnp1_ref[...]

    h1 = jnp.dot(xb, w1_ref[...], preferred_element_type=jnp.float32) + bnp1[0:1]
    mean1 = jnp.sum(h1, axis=0, keepdims=True) * inv_b
    c1 = h1 - mean1
    var1 = jnp.sum(c1 * c1, axis=0, keepdims=True) * inv_b      # two-pass variance
    y1 = bnp1[1:2] * c1 * jax.lax.rsqrt(var1 + BN_EPS) + bnp1[2:3]
    alpha = alpha_ref[0]
    y1 = jnp.where(y1 > 0.0, y1, alpha * y1)                    # PReLU (shared slope)

    bnp2 = bnp2_ref[...]
    h2 = jnp.dot(y1.astype(jnp.bfloat16), w2_ref[...],
                 preferred_element_type=jnp.float32) + bnp2[0:1]
    mean2 = jnp.sum(h2, axis=0, keepdims=True) * inv_b
    c2 = h2 - mean2
    var2 = jnp.sum(c2 * c2, axis=0, keepdims=True) * inv_b
    y2 = bnp2[1:2] * c2 * jax.lax.rsqrt(var2 + BN_EPS) + bnp2[2:3]

    if has_shortcut:
        sc = jnp.dot(xb, sc_in_ref[...], preferred_element_type=jnp.float32) + bnp1[3:4]
    else:
        sc = sc_in_ref[...]
    o_ref[...] = y2 + sc


# --------------------------------------------------------------------------------------
# Stage 1: Linear1 (K-tiled over Fin) -> BN1 -> PReLU  [+ projection shortcut Linear]
# grid = (Fout_pad // TN, Fin_pad // TK1); K is the trailing "arbitrary" reduction axis.
# --------------------------------------------------------------------------------------
def _stage1_kernel(inv_b, has_shortcut,
                   alpha_ref,           # SMEM (1,)
                   x_ref,               # VMEM (B, TK1) bf16
                   w1_ref,              # VMEM (TK1, TN) bf16
                   bnp1_ref,            # VMEM (8, TN) f32: b1,gamma1,beta1[,bs]
                   *rest):
    if has_shortcut:
        ws_ref, y1_ref, sc_ref, acc_ref = rest
    else:
        y1_ref, acc_ref = rest
        ws_ref = sc_ref = None

    k = pl.program_id(1)

    @pl.when(k == 0)
    def _():
        acc_ref[...] = jnp.zeros_like(acc_ref)
        if has_shortcut:
            sc_ref[...] = jnp.zeros_like(sc_ref)        # output tile resident across k

    xb = x_ref[...]
    acc_ref[...] += jnp.dot(xb, w1_ref[...], preferred_element_type=jnp.float32)
    if has_shortcut:
        sc_ref[...] += jnp.dot(xb, ws_ref[...], preferred_element_type=jnp.float32)

    @pl.when(k == pl.num_programs(1) - 1)
    def _():
        bnp = bnp1_ref[...]
        h1 = acc_ref[...] + bnp[0:1]
        mean = jnp.sum(h1, axis=0, keepdims=True) * inv_b
        c = h1 - mean
        var = jnp.sum(c * c, axis=0, keepdims=True) * inv_b     # two-pass variance
        y1 = bnp[1:2] * c * jax.lax.rsqrt(var + BN_EPS) + bnp[2:3]
        alpha = alpha_ref[0]
        y1 = jnp.where(y1 > 0.0, y1, alpha * y1)
        y1_ref[...] = y1.astype(jnp.bfloat16)
        if has_shortcut:
            sc_ref[...] += bnp[3:4]                     # shortcut bias, once


# --------------------------------------------------------------------------------------
# Stage 2: Linear2 (K-tiled, accumulate directly into the resident output tile)
#          -> BN2 -> + shortcut
# grid = (Fout_pad // TN, Fout_pad // TK2)
# --------------------------------------------------------------------------------------
def _stage2_kernel(inv_b,
                   y1_ref,              # VMEM (B, TK2) bf16
                   w2_ref,              # VMEM (TK2, TN) bf16
                   bnp2_ref,            # VMEM (8, TN) f32: b2,gamma2,beta2
                   sc_ref,              # VMEM (B, TN) f32 shortcut tile
                   o_ref):              # VMEM (B, TN) f32 (accumulator + output)
    k = pl.program_id(1)

    @pl.when(k == 0)
    def _():
        o_ref[...] = jnp.zeros_like(o_ref)

    o_ref[...] += jnp.dot(y1_ref[...], w2_ref[...], preferred_element_type=jnp.float32)

    @pl.when(k == pl.num_programs(1) - 1)
    def _():
        bnp = bnp2_ref[...]
        h2 = o_ref[...] + bnp[0:1]
        mean = jnp.sum(h2, axis=0, keepdims=True) * inv_b
        c = h2 - mean
        var = jnp.sum(c * c, axis=0, keepdims=True) * inv_b     # two-pass variance
        y2 = bnp[1:2] * c * jax.lax.rsqrt(var + BN_EPS) + bnp[2:3]
        o_ref[...] = y2 + sc_ref[...]


# --------------------------------------------------------------------------------------
# wrapper
# --------------------------------------------------------------------------------------
def residual_block(x, params, *, tn=None, tk=None, allow_fused=True):
    """x: (B, Fin) f32.  params: dict from init_params.  Returns (B, Fout) f32."""
    B, fin = x.shape
    fout = params["w1_t"].shape[1]
    has_shortcut = params.get("ws_t") is not None

    f32, bf16 = jnp.float32, jnp.bfloat16
    # NOTE: inv_b is baked in (shape-static anyway); distinct B => distinct compile.
    inv_b = 1.0 / B
    cap = _vmem_cap()
    if tn is None:
        tn = 1024 if cap >= (80 << 20) else 512     # bigger tiles on 128 MiB parts
    if tk is None:
        tk = 1024 if cap >= (80 << 20) else 512

    fin128 = _round_up(fin, 128)
    fout128 = _round_up(fout, 128)
    alpha = params["alpha"].reshape((1,)).astype(f32)
    bs = params["bs"] if has_shortcut else None

    # -------------------- fused path (small / medium working sets) --------------------
    fused_bytes = (B * fin128 * 2
                   + fin128 * fout128 * 2 * (2 if has_shortcut else 1)
                   + fout128 * fout128 * 2
                   + 2 * 8 * fout128 * 4
                   + (0 if has_shortcut else B * fout128 * 4)
                   + B * fout128 * 4
                   + 6 * B * fout128 * 4)           # f32 intermediates headroom
    use_fused = allow_fused and (2 * fused_bytes + (4 << 20)) <= min(cap, 40 << 20)

    if use_fused:
        x_bf = _pad2(x, B, fin128).astype(bf16)
        w1_p = _pad2(params["w1_t"], fin128, fout128).astype(bf16)
        w2_p = _pad2(params["w2_t"], fout128, fout128).astype(bf16)
        bnp1 = _pack_bn(params["b1"], params["gamma1"], params["beta1"], bs, fout128)
        bnp2 = _pack_bn(params["b2"], params["gamma2"], params["beta2"], None, fout128)
        if has_shortcut:
            sc_in = _pad2(params["ws_t"], fin128, fout128).astype(bf16)
            sc_shape = (fin128, fout128)
        else:
            sc_in = _pad2(x.astype(f32), B, fout128)    # identity shortcut add in f32
            sc_shape = (B, fout128)

        out_p = pl.pallas_call(
            functools.partial(_fused_kernel, inv_b, has_shortcut),
            grid=(1,),
            in_specs=[
                pl.BlockSpec(memory_space=pltpu.MemorySpace.SMEM),      # alpha
                pl.BlockSpec((B, fin128), lambda i: (0, 0)),            # x bf16
                pl.BlockSpec((fin128, fout128), lambda i: (0, 0)),      # w1
                pl.BlockSpec((8, fout128), lambda i: (0, 0)),           # bn1 pack
                pl.BlockSpec((fout128, fout128), lambda i: (0, 0)),     # w2
                pl.BlockSpec((8, fout128), lambda i: (0, 0)),           # bn2 pack
                pl.BlockSpec(sc_shape, lambda i: (0, 0)),               # ws or x(f32)
            ],
            out_specs=pl.BlockSpec((B, fout128), lambda i: (0, 0)),
            out_shape=jax.ShapeDtypeStruct((B, fout128), f32),
            compiler_params=pltpu.CompilerParams(
                dimension_semantics=("arbitrary",),
                vmem_limit_bytes=_vmem_limit(fused_bytes, cap)),
        )(alpha, x_bf, w1_p, bnp1, w2_p, bnp2, sc_in)
        return out_p[:, :fout]

    # ------------------------------- two-stage path ----------------------------------
    TN, fout_pad = _choose_tile_pad(fout, tn, min_tiles=2)   # >=2 tiles => both TCs busy
    TK1, fin_pad = _choose_tile_pad(fin, tk, min_tiles=1)
    TK2 = _pick_tile(fout_pad, tk)
    n_tiles = fout_pad // TN
    k1_tiles = fin_pad // TK1
    k2_tiles = fout_pad // TK2

    # lane-dense zero padding keeps real columns exact; bf16 x halves residency/DMA
    x_bf = _pad2(x, B, fin_pad).astype(bf16)
    w1_p = _pad2(params["w1_t"], fin_pad, fout_pad).astype(bf16)
    w2_p = _pad2(params["w2_t"], fout_pad, fout_pad).astype(bf16)
    bnp1 = _pack_bn(params["b1"], params["gamma1"], params["beta1"], bs, fout_pad)
    bnp2 = _pack_bn(params["b2"], params["gamma2"], params["beta2"], None, fout_pad)

    # ---------------------------------- stage 1 --------------------------------------
    s1_in_specs = [
        pl.BlockSpec(memory_space=pltpu.MemorySpace.SMEM),          # alpha
        pl.BlockSpec((B, TK1), lambda n, k: (0, k)),                # x bf16 K tile
        pl.BlockSpec((TK1, TN), lambda n, k: (k, n)),               # w1 tile (streamed)
        pl.BlockSpec((8, TN), lambda n, k: (0, n)),                 # packed BN1 params
    ]
    s1_inputs = [alpha, x_bf, w1_p, bnp1]
    s1_out_shape = [jax.ShapeDtypeStruct((B, fout_pad), bf16)]
    s1_out_specs = [pl.BlockSpec((B, TN), lambda n, k: (0, n))]
    if has_shortcut:
        ws_p = _pad2(params["ws_t"], fin_pad, fout_pad).astype(bf16)
        s1_in_specs.append(pl.BlockSpec((TK1, TN), lambda n, k: (k, n)))
        s1_inputs.append(ws_p)
        s1_out_shape.append(jax.ShapeDtypeStruct((B, fout_pad), f32))
        s1_out_specs.append(pl.BlockSpec((B, TN), lambda n, k: (0, n)))

    s1_bytes = (2 * B * TK1 * 2
                + 2 * TK1 * TN * 2 * (2 if has_shortcut else 1)
                + 2 * 8 * TN * 4
                + 2 * B * TN * 2
                + (2 * B * TN * 4 if has_shortcut else 0)
                + B * TN * 4)

    s1_out = pl.pallas_call(
        functools.partial(_stage1_kernel, inv_b, has_shortcut),
        grid=(n_tiles, k1_tiles),
        in_specs=s1_in_specs,
        out_specs=s1_out_specs,
        out_shape=s1_out_shape,
        scratch_shapes=[pltpu.VMEM((B, TN), f32)],
        compiler_params=pltpu.CompilerParams(
            dimension_semantics=("parallel", "arbitrary"),
            vmem_limit_bytes=_vmem_limit(s1_bytes, cap)),
    )(*s1_inputs)

    if has_shortcut:
        y1, sc = s1_out
    else:
        (y1,) = s1_out
        sc = _pad2(x.astype(f32), B, fout_pad)      # identity shortcut: f32 x, no matmul

    # ---------------------------------- stage 2 --------------------------------------
    s2_in_specs = [
        pl.BlockSpec((B, TK2), lambda n, k: (0, k)),                # y1 K tile
        pl.BlockSpec((TK2, TN), lambda n, k: (k, n)),               # w2 tile (streamed)
        pl.BlockSpec((8, TN), lambda n, k: (0, n)),                 # packed BN2 params
        pl.BlockSpec((B, TN), lambda n, k: (0, n)),                 # shortcut tile
    ]
    s2_bytes = (2 * B * TK2 * 2 + 2 * TK2 * TN * 2 + 2 * 8 * TN * 4
                + 2 * B * TN * 4        # shortcut
                + 2 * B * TN * 4)       # output (doubles as accumulator)

    out_p = pl.pallas_call(
        functools.partial(_stage2_kernel, inv_b),
        grid=(n_tiles, k2_tiles),
        in_specs=s2_in_specs,
        out_specs=pl.BlockSpec((B, TN), lambda n, k: (0, n)),
        out_shape=jax.ShapeDtypeStruct((B, fout_pad), f32),
        compiler_params=pltpu.CompilerParams(
            dimension_semantics=("parallel", "arbitrary"),
            vmem_limit_bytes=_vmem_limit(s2_bytes, cap)),
    )(y1, w2_p, bnp2, sc)

    return out_p[:, :fout]


# --------------------------------------------------------------------------------------
# params / reference
# --------------------------------------------------------------------------------------
def init_params(key, input_size, output_size):
    """Deterministic synthetic init matching the nn.Module parameter shapes."""
    ks = jax.random.split(key, 6)
    w1 = jax.random.normal(ks[0], (output_size, input_size), jnp.float32) * 0.1
    b1 = jax.random.normal(ks[1], (output_size,), jnp.float32) * 0.1
    w2 = jax.random.normal(ks[2], (output_size, output_size), jnp.float32) * 0.1
    b2 = jax.random.normal(ks[3], (output_size,), jnp.float32) * 0.1
    params = {
        "alpha": jnp.full((1,), 0.25, jnp.float32),          # nn.PReLU() default
        "w1_t": w1.T, "b1": b1.reshape(1, -1),
        "gamma1": jnp.ones((1, output_size), jnp.float32),
        "beta1": jnp.zeros((1, output_size), jnp.float32),
        "w2_t": w2.T, "b2": b2.reshape(1, -1),
        "gamma2": jnp.ones((1, output_size), jnp.float32),
        "beta2": jnp.zeros((1, output_size), jnp.float32),
        "ws_t": None, "bs": None,                            # identity shortcut
    }
    if input_size != output_size:
        ws = jax.random.normal(ks[4], (output_size, input_size), jnp.float32) * 0.1
        bs = jax.random.normal(ks[5], (output_size,), jnp.float32) * 0.1
        params["ws_t"] = ws.T
        params["bs"] = bs.reshape(1, -1)
    return params


def residual_block_ref(x, p):
    """Pure-JAX reference mirroring the kernel's mixed precision (bf16 matmul inputs,
    f32 accumulation, f32 training-mode BatchNorm1d with two-pass variance)."""
    bf16, f32 = jnp.bfloat16, jnp.float32
    xb = x.astype(bf16)
    h1 = jnp.dot(xb, p["w1_t"].astype(bf16), preferred_element_type=f32) + p["b1"]
    m1 = h1.mean(0, keepdims=True)
    v1 = ((h1 - m1) ** 2).mean(0, keepdims=True)
    y1 = p["gamma1"] * (h1 - m1) / jnp.sqrt(v1 + BN_EPS) + p["beta1"]
    y1 = jnp.where(y1 > 0, y1, p["alpha"][0] * y1)
    y1b = y1.astype(bf16)
    h2 = jnp.dot(y1b, p["w2_t"].astype(bf16), preferred_element_type=f32) + p["b2"]
    m2 = h2.mean(0, keepdims=True)
    v2 = ((h2 - m2) ** 2).mean(0, keepdims=True)
    y2 = p["gamma2"] * (h2 - m2) / jnp.sqrt(v2 + BN_EPS) + p["beta2"]
    if p["ws_t"] is not None:
        sc = jnp.dot(xb, p["ws_t"].astype(bf16), preferred_element_type=f32) + p["bs"]
    else:
        sc = x
    return y2 + sc


if __name__ == "__main__":
    key = jax.random.PRNGKey(0)
    k_x1, k_x2, k_x3, k_x4, k_p1, k_p2, k_p3, k_p4 = jax.random.split(key, 8)
    batch = 8

    # Case 1: projection shortcut, fused single-kernel path
    x1 = jax.random.normal(k_x1, (batch, 16), jnp.float32)
    p1 = init_params(k_p1, 16, 32)
    out1 = jax.block_until_ready(residual_block(x1, p1))
    np.testing.assert_allclose(np.asarray(out1), np.asarray(residual_block_ref(x1, p1)),
                               rtol=1e-2, atol=1e-2)

    # Case 2: identity shortcut, fused single-kernel path
    x2 = jax.random.normal(k_x2, (batch, 32), jnp.float32)
    p2 = init_params(k_p2, 32, 32)
    out2 = jax.block_until_ready(residual_block(x2, p2))
    np.testing.assert_allclose(np.asarray(out2), np.asarray(residual_block_ref(x2, p2)),
                               rtol=1e-2, atol=1e-2)

    # Case 3: projection shortcut, forced two-stage path (exercises K-tiling + megacore tiles)
    x3 = jax.random.normal(k_x3, (batch, 384), jnp.float32)
    p3 = init_params(k_p3, 384, 256)
    out3 = jax.block_until_ready(residual_block(x3, p3, tn=128, tk=128, allow_fused=False))
    np.testing.assert_allclose(np.asarray(out3), np.asarray(residual_block_ref(x3, p3)),
                               rtol=1e-2, atol=1e-2)

    # Case 4: identity shortcut, forced two-stage path
    x4 = jax.random.normal(k_x4, (batch, 256), jnp.float32)
    p4 = init_params(k_p4, 256, 256)
    out4 = jax.block_until_ready(residual_block(x4, p4, tn=128, tk=128, allow_fused=False))
    np.testing.assert_allclose(np.asarray(out4), np.asarray(residual_block_ref(x4, p4)),
                               rtol=1e-2, atol=1e-2)

    print("KERNEL_OK")
</pallas_src>

<mosaic_0001>
module attributes {stable_mosaic.version = 11 : i64} {
  func.func @_fused_kernel(%arg0: i32, %arg1: memref<1xf32, #tpu.memory_space<smem>>, %arg2: memref<8x128xbf16, #tpu.memory_space<vmem>>, %arg3: memref<128x128xbf16, #tpu.memory_space<vmem>>, %arg4: memref<8x128xf32, #tpu.memory_space<vmem>>, %arg5: memref<128x128xbf16, #tpu.memory_space<vmem>>, %arg6: memref<8x128xf32, #tpu.memory_space<vmem>>, %arg7: memref<128x128xbf16, #tpu.memory_space<vmem>>, %arg8: memref<8x128xf32, #tpu.memory_space<vmem>>) attributes {dimension_semantics = [#tpu.dimension_semantics<arbitrary>], iteration_bounds = array<i64: 1>, scalar_prefetch = 0 : i64, scratch_operands = 0 : i64, tpu.core_type = #tpu.core_type<tc>, window_params = [{transform_indices = @transform_0, window_bounds = array<i64: 1>}, {pipeline_mode = #tpu.pipeline_mode<synchronous>, transform_indices = @transform_1, window_bounds = array<i64: 8, 128>}, {pipeline_mode = #tpu.pipeline_mode<synchronous>, transform_indices = @transform_2, window_bounds = array<i64: 128, 128>}, {pipeline_mode = #tpu.pipeline_mode<synchronous>, transform_indices = @transform_3, window_bounds = array<i64: 8, 128>}, {pipeline_mode = #tpu.pipeline_mode<synchronous>, transform_indices = @transform_4, window_bounds = array<i64: 128, 128>}, {pipeline_mode = #tpu.pipeline_mode<synchronous>, transform_indices = @transform_5, window_bounds = array<i64: 8, 128>}, {pipeline_mode = #tpu.pipeline_mode<synchronous>, transform_indices = @transform_6, window_bounds = array<i64: 128, 128>}, {pipeline_mode = #tpu.pipeline_mode<synchronous>, transform_indices = @transform_7, window_bounds = array<i64: 8, 128>}]} {
    %c0 = arith.constant 0 : index
    %c0_0 = arith.constant 0 : index
    %0 = vector.load %arg2[%c0, %c0_0] : memref<8x128xbf16, #tpu.memory_space<vmem>>, vector<8x128xbf16>
    %c0_1 = arith.constant 0 : index
    %c0_2 = arith.constant 0 : index
    %1 = vector.load %arg4[%c0_1, %c0_2] : memref<8x128xf32, #tpu.memory_space<vmem>>, vector<8x128xf32>
    %c0_3 = arith.constant 0 : index
    %c0_4 = arith.constant 0 : index
    %2 = vector.load %arg3[%c0_3, %c0_4] : memref<128x128xbf16, #tpu.memory_space<vmem>>, vector<128x128xbf16>
    %cst = arith.constant dense<0.000000e+00> : vector<8x128xf32>
    %3 = tpu.matmul %0, %2, %cst {dimension_numbers = #tpu.dot_dimension_numbers<[1], [0], [0], [1], [0, 0, 1, 1], [], []>} : vector<8x128xbf16>, vector<128x128xbf16>, vector<8x128xf32> -> vector<8x128xf32>
    %4 = vector.extract_strided_slice %1 {offsets = [0, 0], sizes = [1, 128], strides = [1, 1]} : vector<8x128xf32> to vector<1x128xf32>
    %5 = vector.broadcast %4 : vector<1x128xf32> to vector<8x128xf32>
    %6 = arith.addf %3, %5 : vector<8x128xf32>
    %cst_5 = arith.constant dense<0.000000e+00> : vector<128xf32>
    %7 = vector.multi_reduction <add>, %6, %cst_5 [0] : vector<8x128xf32> to vector<128xf32>
    %8 = vector.shape_cast %7 : vector<128xf32> to vector<1x128xf32>
    %cst_6 = arith.constant 1.250000e-01 : f32
    %9 = vector.broadcast %cst_6 : f32 to vector<1x128xf32>
    %10 = arith.mulf %8, %9 : vector<1x128xf32>
    %11 = vector.broadcast %10 : vector<1x128xf32> to vector<8x128xf32>
    %12 = arith.subf %6, %11 : vector<8x128xf32>
    %13 = arith.mulf %12, %12 : vector<8x128xf32>
    %cst_7 = arith.constant dense<0.000000e+00> : vector<128xf32>
    %14 = vector.multi_reduction <add>, %13, %cst_7 [0] : vector<8x128xf32> to vector<128xf32>
    %15 = vector.shape_cast %14 : vector<128xf32> to vector<1x128xf32>
    %cst_8 = arith.constant 1.250000e-01 : f32
    %16 = vector.broadcast %cst_8 : f32 to vector<1x128xf32>
    %17 = arith.mulf %15, %16 : vector<1x128xf32>
    %18 = vector.extract_strided_slice %1 {offsets = [1, 0], sizes = [1, 128], strides = [1, 1]} : vector<8x128xf32> to vector<1x128xf32>
    %19 = vector.broadcast %18 : vector<1x128xf32> to vector<8x128xf32>
    %20 = arith.mulf %19, %12 : vector<8x128xf32>
    %cst_9 = arith.constant 9.99999974E-6 : f32
    %21 = vector.broadcast %cst_9 : f32 to vector<1x128xf32>
    %22 = arith.addf %17, %21 : vector<1x128xf32>
    %23 = math.rsqrt %22 : vector<1x128xf32>
    %24 = vector.broadcast %23 : vector<1x128xf32> to vector<8x128xf32>
    %25 = arith.mulf %20, %24 : vector<8x128xf32>
    %26 = vector.extract_strided_slice %1 {offsets = [2, 0], sizes = [1, 128], strides = [1, 1]} : vector<8x128xf32> to vector<1x128xf32>
    %27 = vector.broadcast %26 : vector<1x128xf32> to vector<8x128xf32>
    %28 = arith.addf %25, %27 : vector<8x128xf32>
    %c0_10 = arith.constant 0 : index
    %29 = memref.load %arg1[%c0_10] : memref<1xf32, #tpu.memory_space<smem>>
    %cst_11 = arith.constant 0.000000e+00 : f32
    %30 = vector.broadcast %cst_11 : f32 to vector<8x128xf32>
    %31 = arith.cmpf ogt, %28, %30 : vector<8x128xf32>
    %32 = vector.broadcast %29 : f32 to vector<8x128xf32>
    %33 = arith.mulf %32, %28 : vector<8x128xf32>
    %34 = arith.select %31, %28, %33 : vector<8x128xi1>, vector<8x128xf32>
    %c0_12 = arith.constant 0 : index
    %c0_13 = arith.constant 0 : index
    %35 = vector.load %arg6[%c0_12, %c0_13] : memref<8x128xf32, #tpu.memory_space<vmem>>, vector<8x128xf32>
    %36 = arith.truncf %34 : vector<8x128xf32> to vector<8x128xbf16>
    %c0_14 = arith.constant 0 : index
    %c0_15 = arith.constant 0 : index
    %37 = vector.load %arg5[%c0_14, %c0_15] : memref<128x128xbf16, #tpu.memory_space<vmem>>, vector<128x128xbf16>
    %cst_16 = arith.constant dense<0.000000e+00> : vector<8x128xf32>
    %38 = tpu.matmul %36, %37, %cst_16 {dimension_numbers = #tpu.dot_dimension_numbers<[1], [0], [0], [1], [0, 0, 1, 1], [], []>} : vector<8x128xbf16>, vector<128x128xbf16>, vector<8x128xf32> -> vector<8x128xf32>
    %39 = vector.extract_strided_slice %35 {offsets = [0, 0], sizes = [1, 128], strides = [1, 1]} : vector<8x128xf32> to vector<1x128xf32>
    %40 = vector.broadcast %39 : vector<1x128xf32> to vector<8x128xf32>
    %41 = arith.addf %38, %40 : vector<8x128xf32>
    %cst_17 = arith.constant dense<0.000000e+00> : vector<128xf32>
    %42 = vector.multi_reduction <add>, %41, %cst_17 [0] : vector<8x128xf32> to vector<128xf32>
    %43 = vector.shape_cast %42 : vector<128xf32> to vector<1x128xf32>
    %cst_18 = arith.constant 1.250000e-01 : f32
    %44 = vector.broadcast %cst_18 : f32 to vector<1x128xf32>
    %45 = arith.mulf %43, %44 : vector<1x128xf32>
    %46 = vector.broadcast %45 : vector<1x128xf32> to vector<8x128xf32>
    %47 = arith.subf %41, %46 : vector<8x128xf32>
    %48 = arith.mulf %47, %47 : vector<8x128xf32>
    %cst_19 = arith.constant dense<0.000000e+00> : vector<128xf32>
    %49 = vector.multi_reduction <add>, %48, %cst_19 [0] : vector<8x128xf32> to vector<128xf32>
    %50 = vector.shape_cast %49 : vector<128xf32> to vector<1x128xf32>
    %cst_20 = arith.constant 1.250000e-01 : f32
    %51 = vector.broadcast %cst_20 : f32 to vector<1x128xf32>
    %52 = arith.mulf %50, %51 : vector<1x128xf32>
    %53 = vector.extract_strided_slice %35 {offsets = [1, 0], sizes = [1, 128], strides = [1, 1]} : vector<8x128xf32> to vector<1x128xf32>
    %54 = vector.broadcast %53 : vector<1x128xf32> to vector<8x128xf32>
    %55 = arith.mulf %54, %47 : vector<8x128xf32>
    %cst_21 = arith.constant 9.99999974E-6 : f32
    %56 = vector.broadcast %cst_21 : f32 to vector<1x128xf32>
    %57 = arith.addf %52, %56 : vector<1x128xf32>
    %58 = math.rsqrt %57 : vector<1x128xf32>
    %59 = vector.broadcast %58 : vector<1x128xf32> to vector<8x128xf32>
    %60 = arith.mulf %55, %59 : vector<8x128xf32>
    %61 = vector.extract_strided_slice %35 {offsets = [2, 0], sizes = [1, 128], strides = [1, 1]} : vector<8x128xf32> to vector<1x128xf32>
    %62 = vector.broadcast %61 : vector<1x128xf32> to vector<8x128xf32>
    %63 = arith.addf %60, %62 : vector<8x128xf32>
    %c0_22 = arith.constant 0 : index
    %c0_23 = arith.constant 0 : index
    %64 = vector.load %arg7[%c0_22, %c0_23] : memref<128x128xbf16, #tpu.memory_space<vmem>>, vector<128x128xbf16>
    %cst_24 = arith.constant dense<0.000000e+00> : vector<8x128xf32>
    %65 = tpu.matmul %0, %64, %cst_24 {dimension_numbers = #tpu.dot_dimension_numbers<[1], [0], [0], [1], [0, 0, 1, 1], [], []>} : vector<8x128xbf16>, vector<128x128xbf16>, vector<8x128xf32> -> vector<8x128xf32>
    %66 = vector.extract_strided_slice %1 {offsets = [3, 0], sizes = [1, 128], strides = [1, 1]} : vector<8x128xf32> to vector<1x128xf32>
    %67 = vector.broadcast %66 : vector<1x128xf32> to vector<8x128xf32>
    %68 = arith.addf %65, %67 : vector<8x128xf32>
    %69 = arith.addf %63, %68 : vector<8x128xf32>
    %c0_25 = arith.constant 0 : index
    %c0_26 = arith.constant 0 : index
    %70 = vector.load %arg8[%c0_25, %c0_26] : memref<8x128xf32, #tpu.memory_space<vmem>>, vector<8x128xf32>
    tpu.vector_store %arg8[%c0_25, %c0_26], %69 {strides = array<i32>} : memref<8x128xf32, #tpu.memory_space<vmem>>, vector<8x128xf32>,
    return
  }
  func.func @transform_0(%arg0: i32) -> i32 {
    %c0_i32 = arith.constant 0 : i32
    %c0_i32_0 = arith.constant 0 : i32
    return %c0_i32 : i32
  }
  func.func @transform_1(%arg0: i32) -> (i32, i32) {
    %c0_i32 = arith.constant 0 : i32
    %c0_i32_0 = arith.constant 0 : i32
    %c0_i32_1 = arith.constant 0 : i32
    return %c0_i32, %c0_i32_0 : i32, i32
  }
  func.func @transform_2(%arg0: i32) -> (i32, i32) {
    %c0_i32 = arith.constant 0 : i32
    %c0_i32_0 = arith.constant 0 : i32
    %c0_i32_1 = arith.constant 0 : i32
    return %c0_i32, %c0_i32_0 : i32, i32
  }
  func.func @transform_3(%arg0: i32) -> (i32, i32) {
    %c0_i32 = arith.constant 0 : i32
    %c0_i32_0 = arith.constant 0 : i32
    %c0_i32_1 = arith.constant 0 : i32
    return %c0_i32, %c0_i32_0 : i32, i32
  }
  func.func @transform_4(%arg0: i32) -> (i32, i32) {
    %c0_i32 = arith.constant 0 : i32
    %c0_i32_0 = arith.constant 0 : i32
    %c0_i32_1 = arith.constant 0 : i32
    return %c0_i32, %c0_i32_0 : i32, i32
  }
  func.func @transform_5(%arg0: i32) -> (i32, i32) {
    %c0_i32 = arith.constant 0 : i32
    %c0_i32_0 = arith.constant 0 : i32
    %c0_i32_1 = arith.constant 0 : i32
    return %c0_i32, %c0_i32_0 : i32, i32
  }
  func.func @transform_6(%arg0: i32) -> (i32, i32) {
    %c0_i32 = arith.constant 0 : i32
    %c0_i32_0 = arith.constant 0 : i32
    %c0_i32_1 = arith.constant 0 : i32
    return %c0_i32, %c0_i32_0 : i32, i32
  }
  func.func @transform_7(%arg0: i32) -> (i32, i32) {
    %c0_i32 = arith.constant 0 : i32
    %c0_i32_0 = arith.constant 0 : i32
    %c0_i32_1 = arith.constant 0 : i32
    return %c0_i32, %c0_i32_0 : i32, i32
  }
}

</mosaic_0001>

<bundles_post_ra>
// kernel: tpu_custom_call.1
= control target key start
LH: loop header
LB: loop body
LE: loop exit
PB: predicated region body
PF: predicated region fallthrough
CT: control target
= control target key end

     0   :  { %13 = vsyncpa [#allocation4], 0  ;;  %s927_s0 = inlined_call_operand.<no memory space> [shape: f32[1], index: 0, kind: input, shape index: {}]   ;;  %s928_s1 = inlined_call_operand.hbm [shape: bf16[8,128], index: 1, kind: input, shape index: {}]   ;;  %s929_s2 = inlined_call_operand.hbm [shape: bf16[128,128], index: 2, kind: input, shape index: {}]   ;;  %s930_s3 = inlined_call_operand.vmem [shape: f32[8,128], index: 3, kind: input, shape index: {}]   ;;  %s931_s4 = inlined_call_operand.hbm [shape: bf16[128,128], index: 4, kind: input, shape index: {}]   ;;  %s932_s5 = inlined_call_operand.vmem [shape: f32[8,128], index: 5, kind: input, shape index: {}]   ;;  %s933_s6 = inlined_call_operand.hbm [shape: bf16[128,128], index: 6, kind: input, shape index: {}]   ;;  %s934_s7 = inlined_call_operand.hbm [shape: f32[8,128], index: 7, kind: output, shape index: {}]  }
   0x1   :  { %14 = vsyncpa [#allocation7], 0 }
   0x2   :  { %15 = vsyncpa [#allocation10], 0 }
   0x3   :  { %16 = vsyncpa [#allocation5], 0  ;;  %s758_s24 = smov [#allocation6]   ;;  %s640_s28 = scalar_lea.hbm %s929_s2, 1024 }
   0x4   :  { %s34_s25 = sshll.u32 %s758_s24, 4  ;;  %p641_p0 = scmp.ne.s32.totalorder %s929_s2, %s640_s28  ;;  %s35_s25 = int_to_ptr.vmem [resolvable:$true] %s34_s25 }
   0x5   :  { %p644_p1 = scmp.lt.u32.totalorder %s640_s28, %s929_s2 }
   0x7   :  { %p646_p2 = pnand %p644_p1, %p641_p0 }
   0x9   :  { %649 = shalt.err (!%p646_p2)
}
   0xa   :  { %s650_s10 = scalar_lea.vmem %s35_s25, 1024  ;;  %p655_p4 = scmp.lt.s32.totalorder %s35_s25, %s35_s25 }
   0xb   :  { %p651_p3 = scmp.ne.s32.totalorder %s35_s25, %s650_s10  ;;  %p656_p5 = scmp.lt.s32.totalorder %s650_s10, %s650_s10 }
   0xd   :  { %p657_p6 = por %p656_p5, %p655_p4 }
   0xf   :  { %p658_p7 = pnand %p657_p6, %p651_p3 }
  0x11   :  { %661 = shalt.err (!%p658_p7)
}
  0x12   :  { %s759_s11 = smov 64   ;;  %s760_s12 = smov 4  }
  0x13   :  { %40 = dma.hbm_to_vmem [thread:$0]  %s929_s2, 1024, %s35_s25, [#allocation7], %s759_s11, %s759_s11, %s760_s12  }
  0x14   :  { %s761_s15 = smov [#allocation3]   ;;  %s762_s17 = smov [#allocation8]  }
  0x15   :  { %s25_s16 = sshll.u32 %s761_s15, 4  ;;  %s48_s18 = sshll.u32 %s762_s17, 4  ;;  %s26_s16 = int_to_ptr.vmem [resolvable:$true] %s25_s16  ;;  %s49_s18 = int_to_ptr.vmem [resolvable:$true] %s48_s18 }
  0x16   :  { %s662_s21 = scalar_lea.hbm %s928_s1, 64 }
  0x17   :  { %p663_p8 = scmp.ne.s32.totalorder %s928_s1, %s662_s21  ;;  %p666_p9 = scmp.lt.u32.totalorder %s662_s21, %s928_s1 }
  0x19   :  { %p668_p10 = pnand %p666_p9, %p663_p8 }
  0x1b   :  { %671 = shalt.err (!%p668_p10)
}
  0x1c   :  { %s672_s2 = scalar_lea.vmem %s26_s16, 64  ;;  %p677_p12 = scmp.lt.s32.totalorder %s26_s16, %s26_s16 }
  0x1d   :  { %p673_p11 = scmp.ne.s32.totalorder %s26_s16, %s672_s2  ;;  %p678_p13 = scmp.lt.s32.totalorder %s672_s2, %s672_s2 }
  0x1f   :  { %p679_p0 = por %p678_p13, %p677_p12 }
  0x21   :  { %p680_p1 = pnand %p679_p0, %p673_p11 }
  0x23   :  { %683 = shalt.err (!%p680_p1)
}
  0x24   :  { %28 = dma.hbm_to_vmem [thread:$0]  %s928_s1, 64, %s26_s16, [#allocation4]  }
  0x25   :  { %s684_s30 = scalar_lea.hbm %s931_s4, 1024 }
  0x26   :  { %p685_p2 = scmp.ne.s32.totalorder %s931_s4, %s684_s30  ;;  %p688_p3 = scmp.lt.u32.totalorder %s684_s30, %s931_s4 }
  0x28   :  { %p690_p4 = pnand %p688_p3, %p685_p2 }
  0x2a   :  { %693 = shalt.err (!%p690_p4)
}
  0x2b   :  { %s694_s14 = scalar_lea.vmem %s49_s18, 1024  ;;  %p699_p6 = scmp.lt.s32.totalorder %s49_s18, %s49_s18 }
  0x2c   :  { %p695_p5 = scmp.ne.s32.totalorder %s49_s18, %s694_s14  ;;  %p700_p7 = scmp.lt.s32.totalorder %s694_s14, %s694_s14 }
  0x2e   :  { %p701_p8 = por %p700_p7, %p699_p6 }
  0x30   :  { %p702_p9 = pnand %p701_p8, %p695_p5 }
  0x32   :  { %705 = shalt.err (!%p702_p9)
}
  0x33   :  { %54 = dma.hbm_to_vmem [thread:$0]  %s931_s4, 1024, %s49_s18, [#allocation7], %s759_s11, %s759_s11, %s760_s12  }
  0x34   :  { %s763_s16 = smov [#allocation9]   ;;  %s706_s21 = scalar_lea.hbm %s933_s6, 1024 }
  0x35   :  { %s62_s17 = sshll.u32 %s763_s16, 4  ;;  %p707_p10 = scmp.ne.s32.totalorder %s933_s6, %s706_s21  ;;  %s63_s17 = int_to_ptr.vmem [resolvable:$true] %s62_s17 }
  0x36   :  { %p710_p11 = scmp.lt.u32.totalorder %s706_s21, %s933_s6 }
  0x38   :  { %p712_p12 = pnand %p710_p11, %p707_p10 }
  0x3a   :  { %715 = shalt.err (!%p712_p12)
}
  0x3b   :  { %s716_s2 = scalar_lea.vmem %s63_s17, 1024  ;;  %p721_p0 = scmp.lt.s32.totalorder %s63_s17, %s63_s17 }
  0x3c   :  { %p717_p13 = scmp.ne.s32.totalorder %s63_s17, %s716_s2  ;;  %p722_p1 = scmp.lt.s32.totalorder %s716_s2, %s716_s2 }
  0x3e   :  { %p723_p2 = por %p722_p1, %p721_p0 }
  0x40   :  { %p724_p3 = pnand %p723_p2, %p717_p13 }
  0x42   :  { %727 = shalt.err (!%p724_p3)
}
  0x43   :  { %68 = dma.hbm_to_vmem [thread:$0]  %s933_s6, 1024, %s63_s17, [#allocation10], %s759_s11, %s759_s11, %s760_s12  }
  0x44   :  { %750 = dma.done.wait [#allocation4], 64  }
  0x45   :  { %751 = vsyncadd [#allocation4], 4294967232 }
  0x46   :  { %752 = dma.done.wait [#allocation7], 2048  }
  0x47   :  { %753 = vsyncadd [#allocation7], 4294965248 }
  0x48   :  { %754 = dma.done.wait [#allocation10], 1024  }
  0x49   :  { %755 = vsyncadd [#allocation10], 4294966272  ;;  %v764_v0 = vmov 0.0   ;;  %vm765_vm0 = vmmov 0   ;;  %v612_v1 = vld [vmem:[#allocation6] sm:$0xff]   ;;  %v613_v2 = vld [vmem:[#allocation6 + $0x8] sm:$0xff]   ;;  %v100_v26 = vlaneseq  ;;  %v223_v60 = vstv %s927_s0 }
  0x4a   :  { %543 = vmatprep.subr.bf16.mxu0 %v764_v0  ;;  %559 = vmatprep.mubr.msk.bf16.mxu0 %vm765_vm0, %v764_v0  ;;  %v614_v3 = vld [vmem:[#allocation6 + $0x10] sm:$0xff]   ;;  %v615_v4 = vld [vmem:[#allocation6 + $0x18] sm:$0xff]   ;;  %v616_v5 = vld [vmem:[#allocation6 + $0x20] sm:$0xff]   ;;  %s766_s0 = smov [#allocation11]  }
  0x4b   :  { %563 = vmatprep.subr.bf16.mxu1 %v764_v0  ;;  %579 = vmatprep.mubr.msk.bf16.mxu1 %vm765_vm0, %v764_v0  ;;  %v617_v6 = vld [vmem:[#allocation6 + $0x28] sm:$0xff]   ;;  %v618_v7 = vld [vmem:[#allocation6 + $0x30] sm:$0xff]   ;;  %v619_v8 = vld [vmem:[#allocation6 + $0x38] sm:$0xff]   ;;  %v894_v27 = vshrl.u32 %v100_v26, 7 }
  0x4c   :  { %544 = vmatpush3.bf16.msra.mxu0 %v612_v1  ;;  %v82_v9 = vld [vmem:[#allocation3] sm:$0xf]  ;;  %v620_v10 = vld [vmem:[#allocation8] sm:$0xff]   ;;  %v621_v11 = vld [vmem:[#allocation8 + $0x8] sm:$0xff]  }
  0x4d   :  { %545 = vmatprep.subr.bf16.mxu0 %v764_v0  ;;  %564 = vmatpush3.bf16.msra.mxu1 %v620_v10  ;;  %v622_v12 = vld [vmem:[#allocation8 + $0x10] sm:$0xff]   ;;  %v623_v13 = vld [vmem:[#allocation8 + $0x18] sm:$0xff]   ;;  %v624_v14 = vld [vmem:[#allocation8 + $0x20] sm:$0xff]   ;;  %v102_v28 = vsub.s32 0, %v894_v27  ;;  %v210_v53 = vsub.s32 1, %v894_v27  ;;  %v218_v55 = vsub.s32 2, %v894_v27 }
  0x4e   :  { %565 = vmatprep.subr.bf16.mxu1 %v764_v0  ;;  %v625_v15 = vld [vmem:[#allocation8 + $0x28] sm:$0xff]   ;;  %v626_v16 = vld [vmem:[#allocation8 + $0x30] sm:$0xff]   ;;  %v627_v17 = vld [vmem:[#allocation8 + $0x38] sm:$0xff]  }
  0x4f   :  { %v628_v18 = vld [vmem:[#allocation9] sm:$0xff]   ;;  %v629_v19 = vld [vmem:[#allocation9 + $0x8] sm:$0xff]   ;;  %v630_v20 = vld [vmem:[#allocation9 + $0x10] sm:$0xff]  }
  0x50   :  { %546 = vmatpush3.bf16.msra.mxu0 %v613_v2  ;;  %v631_v21 = vld [vmem:[#allocation9 + $0x18] sm:$0xff]   ;;  %v632_v22 = vld [vmem:[#allocation9 + $0x20] sm:$0xff]   ;;  %v633_v23 = vld [vmem:[#allocation9 + $0x28] sm:$0xff]  }
  0x51   :  { %547 = vmatprep.subr.bf16.mxu0 %v764_v0  ;;  %566 = vmatpush3.bf16.msra.mxu1 %v621_v11  ;;  %v634_v24 = vld [vmem:[#allocation9 + $0x30] sm:$0xff]   ;;  %v635_v25 = vld [vmem:[#allocation9 + $0x38] sm:$0xff]  }
  0x52   :  { %567 = vmatprep.subr.bf16.mxu1 %v764_v0  ;;  %v900_v29 = vld [vmem:[%s930_s3] sm:$0xff] }
  0x53   :  { %v103_v30 = vrot.slane %v900_v29, %v102_v28  ;;  %v211_v54 = vrot.slane %v900_v29, %v210_v53  ;;  %v219_v57 = vrot.slane %v900_v29, %v218_v55 }
  0x54   :  { %548 = vmatpush3.bf16.msra.mxu0 %v614_v3 }
  0x55   :  { %549 = vmatprep.subr.bf16.mxu0 %v764_v0  ;;  %568 = vmatpush3.bf16.msra.mxu1 %v622_v12 }
  0x56   :  { %569 = vmatprep.subr.bf16.mxu1 %v764_v0 }
  0x58   :  { %550 = vmatpush3.bf16.msra.mxu0 %v615_v4 }
  0x59   :  { %551 = vmatprep.subr.bf16.mxu0 %v764_v0  ;;  %570 = vmatpush3.bf16.msra.mxu1 %v623_v13 }
  0x5a   :  { %571 = vmatprep.subr.bf16.mxu1 %v764_v0 }
  0x5c   :  { %552 = vmatpush3.bf16.msra.mxu0 %v616_v5  ;;  %v226_v5 = vld [vmem:[%s932_s5] sm:$0xff]  ;;  %s481_s5 = sshll.u32 %s766_s0, 4  ;;  %s482_s5 = int_to_ptr.vmem [resolvable:$true] %s481_s5 }
  0x5d   :  { %553 = vmatprep.subr.bf16.mxu0 %v764_v0  ;;  %572 = vmatpush3.bf16.msra.mxu1 %v624_v14  ;;  %s728_s28 = scalar_lea.vmem %s482_s5, 128  ;;  %p733_p5 = scmp.lt.s32.totalorder %s482_s5, %s482_s5 }
  0x5e   :  { %573 = vmatprep.subr.bf16.mxu1 %v764_v0  ;;  %p729_p4 = scmp.ne.s32.totalorder %s482_s5, %s728_s28  ;;  %p734_p6 = scmp.lt.s32.totalorder %s728_s28, %s728_s28 }
  0x60   :  { %554 = vmatpush3.bf16.msra.mxu0 %v617_v6  ;;  %v247_v6 = vrot.slane %v226_v5, %v102_v28  ;;  %p735_p7 = por %p734_p6, %p733_p5 }
  0x61   :  { %555 = vmatprep.subr.bf16.mxu0 %v764_v0  ;;  %574 = vmatpush3.bf16.msra.mxu1 %v625_v15 }
  0x62   :  { %575 = vmatprep.subr.bf16.mxu1 %v764_v0  ;;  %p736_p8 = pnand %p735_p7, %p729_p4 }
  0x64   :  { %556 = vmatpush3.bf16.msra.mxu0 %v618_v7 }
  0x65   :  { %557 = vmatprep.subr.bf16.mxu0 %v764_v0  ;;  %576 = vmatpush3.bf16.msra.mxu1 %v626_v16 }
  0x66   :  { %577 = vmatprep.subr.bf16.mxu1 %v764_v0 }
  0x68   :  { %558 = vmatpush3.bf16.msra.mxu0 %v619_v8 }
  0x69   :  { %583 = vmatprep.subr.bf16.mxu0 %v764_v0  ;;  %578 = vmatpush3.bf16.msra.mxu1 %v627_v17 }
  0x6b   :  { %560 = vmatmul.mubr.bf16.vlgmr.msra.gmra.mrb[0].mxu0 %v82_v9 }
  0x6c   :  { %599 = vmatprep.mubr.msk.bf16.mxu0 %vm765_vm0, %v764_v0  ;;  %584 = vmatpush3.bf16.msra.mxu0 %v628_v18 }
  0x6d   :  { %585 = vmatprep.subr.bf16.mxu0 %v764_v0 }
  0x70   :  { %586 = vmatpush3.bf16.msra.mxu0 %v629_v19 }
  0x71   :  { %587 = vmatprep.subr.bf16.mxu0 %v764_v0 }
  0x74   :  { %588 = vmatpush3.bf16.msra.mxu0 %v630_v20 }
  0x75   :  { %589 = vmatprep.subr.bf16.mxu0 %v764_v0 }
  0x78   :  { %590 = vmatpush3.bf16.msra.mxu0 %v631_v21 }
  0x79   :  { %591 = vmatprep.subr.bf16.mxu0 %v764_v0 }
  0x7c   :  { %592 = vmatpush3.bf16.msra.mxu0 %v632_v22 }
  0x7d   :  { %593 = vmatprep.subr.bf16.mxu0 %v764_v0 }
  0x80   :  { %594 = vmatpush3.bf16.msra.mxu0 %v633_v23 }
  0x81   :  { %595 = vmatprep.subr.bf16.mxu0 %v764_v0 }
  0x84   :  { %596 = vmatpush3.bf16.msra.mxu0 %v634_v24 }
  0x85   :  { %597 = vmatprep.subr.bf16.mxu0 %v764_v0 }
  0x88   :  { %598 = vmatpush3.bf16.msra.mxu0 %v635_v25 }
  0x8b   :  { %600 = vmatmul.mubr.bf16.vlgmr.msra.gmra.mrb[4].mxu0 %v82_v9 }
 0x13e   :  { %v186_v31 = vpop.f32.mrb[0].mxu0 }
 0x13f   :  { %v187_v32 = vadd.f32 %v186_v31, %v103_v30  ;;  %v561_v33 = vpop.f32.mrb[1].mxu0  ;;  %v383_v31 = vsub.s32 3, %v894_v27 }
 0x140   :  { %v189_v34 = vpop.f32.mrb[2].mxu0 }
 0x141   :  { %v192_v35 = vrot.slane %v187_v32, 4  ;;  %v562_v36 = vpop.f32.mrb[3].mxu0  ;;  %v384_v33 = vrot.slane %v900_v29, %v383_v31 }
 0x143   :  { %v193_v37 = vadd.f32 %v192_v35, %v187_v32  ;;  %v363_v35 = vrot.slane %v226_v5, %v218_v55 }
 0x145   :  { %v194_v38 = vrot.slane %v193_v37, 2 }
 0x147   :  { %v195_v39 = vadd.f32 %v194_v38, %v193_v37 }
 0x149   :  { %v196_v40 = vrot.slane %v195_v39, 1 }
 0x14b   :  { %v197_v41 = vadd.f32 %v196_v40, %v195_v39 }
 0x14d   :  { %v198_v42 = vmul.f32 0.125, %v197_v41 }
 0x14f   :  { %v199_v43 = vsub.f32 %v187_v32, %v198_v42  ;;  %v355_v32 = vrot.slane %v226_v5, %v210_v53 }
 0x151   :  { %v200_v44 = vmul.f32 %v199_v43, %v199_v43  ;;  %v212_v56 = vmul.f32 %v211_v54, %v199_v43 }
 0x153   :  { %v201_v45 = vrot.slane %v200_v44, 4 }
 0x155   :  { %v202_v46 = vadd.f32 %v201_v45, %v200_v44 }
 0x157   :  { %v203_v47 = vrot.slane %v202_v46, 2 }
 0x159   :  { %v204_v48 = vadd.f32 %v203_v47, %v202_v46 }
 0x15b   :  { %v205_v49 = vrot.slane %v204_v48, 1 }
 0x15d   :  { %v206_v50 = vadd.f32 %v205_v49, %v204_v48 }
 0x15e   :  { %v467_v1 = vpop.f32.mrb[4].mxu0 }
 0x15f   :  { %v207_v51 = vmul.f32 0.125, %v206_v50  ;;  %v601_v2 = vpop.f32.mrb[5].mxu0  ;;  %v468_v38 = vadd.f32 %v467_v1, %v384_v33 }
 0x160   :  { %v470_v3 = vpop.f32.mrb[6].mxu0 }
 0x161   :  { %v213_v52 = vadd.f32 1e-05, %v207_v51  ;;  %v602_v4 = vpop.f32.mrb[7].mxu0 }
 0x163   :  { %636 = vrsqrt.f32 %v213_v52 }
 0x16d   :  { %v637_v58 = vpop.eup %636 }
 0x16e   :  { %v215_v59 = vmul.f32 %v637_v58, %v212_v56 }
 0x170   :  { %v220_v61 = vadd.f32 %v219_v57, %v215_v59 }
 0x172   :  { %vm222_vm1 = vcmp.gt.f32.partialorder %v220_v61, 0.0  ;;  %v224_v62 = vmul.f32 %v223_v60, %v220_v61 }
 0x174   :  { %v225_v63 = vsel %vm222_vm1, %v220_v61, %v224_v62 }
 0x175   :  { %v227_v0 = vpack.c.bf16 %v225_v63, %v225_v63 }
 0x177   :  { %580 = vmatmul.mubr.bf16.vlgmr.msra.gmra.mrb[0].mxu1 %v227_v0 }
 0x24a   :  { %v330_v7 = vpop.f32.mrb[0].mxu1 }
 0x24b   :  { %v331_v8 = vadd.f32 %v330_v7, %v247_v6  ;;  %v581_v9 = vpop.f32.mrb[1].mxu1 }
 0x24c   :  { %v333_v10 = vpop.f32.mrb[2].mxu1 }
 0x24d   :  { %v336_v11 = vrot.slane %v331_v8, 4  ;;  %v582_v12 = vpop.f32.mrb[3].mxu1 }
 0x24f   :  { %v337_v13 = vadd.f32 %v336_v11, %v331_v8 }
 0x251   :  { %v338_v14 = vrot.slane %v337_v13, 2 }
 0x253   :  { %v339_v15 = vadd.f32 %v338_v14, %v337_v13 }
 0x255   :  { %v340_v16 = vrot.slane %v339_v15, 1 }
 0x257   :  { %v341_v17 = vadd.f32 %v340_v16, %v339_v15 }
 0x259   :  { %v342_v18 = vmul.f32 0.125, %v341_v17 }
 0x25b   :  { %v343_v19 = vsub.f32 %v331_v8, %v342_v18 }
 0x25d   :  { %v344_v20 = vmul.f32 %v343_v19, %v343_v19  ;;  %v356_v34 = vmul.f32 %v355_v32, %v343_v19 }
 0x25f   :  { %v345_v21 = vrot.slane %v344_v20, 4 }
 0x261   :  { %v346_v22 = vadd.f32 %v345_v21, %v344_v20 }
 0x263   :  { %v347_v23 = vrot.slane %v346_v22, 2 }
 0x265   :  { %v348_v24 = vadd.f32 %v347_v23, %v346_v22 }
 0x267   :  { %v349_v25 = vrot.slane %v348_v24, 1 }
 0x269   :  { %v350_v26 = vadd.f32 %v349_v25, %v348_v24 }
 0x26b   :  { %v351_v28 = vmul.f32 0.125, %v350_v26 }
 0x26d   :  { %v357_v30 = vadd.f32 1e-05, %v351_v28 }
 0x26f   :  { %638 = vrsqrt.f32 %v357_v30 }
 0x279   :  { %v639_v36 = vpop.eup %638 }
 0x27a   :  { %v359_v37 = vmul.f32 %v639_v36, %v356_v34 }
 0x27c   :  { %v364_v39 = vadd.f32 %v363_v35, %v359_v37 }
 0x27e   :  { %v473_v40 = vadd.f32 %v468_v38, %v364_v39 }
 0x280   :  { %474 = vst [vmem:[#allocation11] sm:$0xff] %v473_v40 }
 0x281   :  { %739 = shalt.err (!%p736_p8)
}
 0x282   :  { %s740_s8 = scalar_lea.hbm %s934_s7, 128 }
 0x283   :  { %p741_p9 = scmp.ne.s32.totalorder %s934_s7, %s740_s8  ;;  %p744_p10 = scmp.lt.u32.totalorder %s740_s8, %s934_s7 }
 0x285   :  { %p746_p11 = pnand %p744_p10, %p741_p9 }
 0x287   :  { %749 = shalt.err (!%p746_p11)
}
 0x288   :  { %484 = dma.vmem_to_hbm [thread:$0]  %s482_s5, 128, %s934_s7, [#allocation5]  }
 0x289   :  { %756 = dma.done.wait [#allocation5], 128  }
 0x28a   :  { %757 = vsyncadd [#allocation5], 4294967168 }
 0x28b   :  { %488 = vsyncpa [#allocation4], 1 }
 0x28c   :  { %489 = vsyncpa [#allocation7], 1 }
 0x28d   :  { %490 = vsyncpa [#allocation10], 1 }
 0x28e   :  { %491 = vsyncpa [#allocation5], 1 }

</bundles_post_ra>
